<compile_context>
chip_gen: v7x
topology: tpu7x:2x2x1
jax: 0.10.0
libtpu: 0.0.40
codegen_flags: <defaults>
</compile_context>

<pallas_src>
import functools

import jax
import jax.numpy as jnp
from jax import lax
from jax.experimental import pallas as pl
from jax.experimental.pallas import tpu as pltpu


def _round_up(x, m):
    return ((x + m - 1) // m) * m


def _pick_tile(size, candidates):
    """Largest candidate that evenly divides `size` (size is pre-padded so the
    smallest candidate always divides)."""
    for c in candidates:
        if size % c == 0:
            return c
    return candidates[-1]


def _fc_kernel(x_ref, w_ref, b_ref, o_ref):
    """One (tm, tn) output tile of y = x @ W^T + b, full-K in a single MXU call.

    x_ref: (tm, K)   activations
    w_ref: (tn, K)   weight in PyTorch (out_features, in_features) layout
    b_ref: (1, tn)   bias
    o_ref: (tm, tn)  output tile
    """
    x = x_ref[...]
    w = w_ref[...]
    if x.dtype != w.dtype:
        # bf16-weight path: feed the MXU in the (narrower) weight dtype,
        # accumulate in f32 via preferred_element_type below.
        x = x.astype(w.dtype)
    acc = lax.dot_general(
        x,
        w,
        dimension_numbers=(((1,), (1,)), ((), ())),  # contract K with K (W^T)
        preferred_element_type=jnp.float32,
    )
    o_ref[...] = (acc + b_ref[...].astype(jnp.float32)).astype(o_ref.dtype)


def prepare_fc_params(weight, bias, *, param_dtype=None):
    """One-time (init-time) parameter preparation — do NOT call per forward.

    weight: (num_classes, in_features)  PyTorch Linear layout
    bias:   (num_classes,)

    Pads num_classes and in_features up to multiples of 128 (zeros do not
    change the result) and optionally casts the weight to `param_dtype`
    (e.g. jnp.bfloat16) to halve HBM traffic for this bandwidth-bound layer.
    """
    n, k = weight.shape
    n_pad = _round_up(n, 128)
    k_pad = _round_up(k, 128)
    w = jnp.pad(weight, ((0, n_pad - n), (0, k_pad - k)))
    b = jnp.pad(bias, (0, n_pad - n)).reshape(1, n_pad)
    if param_dtype is not None:
        w = w.astype(param_dtype)
    return w, b


@functools.partial(jax.jit, static_argnames=("num_classes",))
def resnet_classifier_forward(x, weight_p, bias_p, *, num_classes):
    """
    x:        (batch, in_features)              activations
    weight_p: (N_pad, K_pad)  pre-padded weight from prepare_fc_params
    bias_p:   (1, N_pad)      pre-padded bias   from prepare_fc_params
    returns   (batch, num_classes)
    """
    m, k = x.shape
    n_pad, k_pad = weight_p.shape

    # Pad the batch to a multiple of 8 (f32 sublane minimum) and the feature
    # axis up to the weight's padded K (zeros contribute nothing to the dot).
    m_pad = _round_up(m, 8)
    x_p = jnp.pad(x, ((0, m_pad - m), (0, k_pad - k)))

    tm = _pick_tile(m_pad, (256, 128, 64, 32, 16, 8))
    tn = _pick_tile(n_pad, (512, 384, 256, 128))
    grid = (m_pad // tm, n_pad // tn)

    out = pl.pallas_call(
        _fc_kernel,
        out_shape=jax.ShapeDtypeStruct((m_pad, n_pad), x.dtype),
        grid_spec=pltpu.PrefetchScalarGridSpec(
            num_scalar_prefetch=0,
            grid=grid,
            in_specs=[
                pl.BlockSpec((tm, k_pad), lambda i, j: (i, 0)),  # x rows, full K
                pl.BlockSpec((tn, k_pad), lambda i, j: (j, 0)),  # W rows, full K
                pl.BlockSpec((1, tn), lambda i, j: (0, j)),      # bias slice
            ],
            out_specs=pl.BlockSpec((tm, tn), lambda i, j: (i, j)),
        ),
        compiler_params=pltpu.CompilerParams(
            # Both axes independent -> shard across v7x's 2 TensorCores when
            # the grid has >= 2 blocks; harmless on v5e/v6e.
            dimension_semantics=("parallel", "parallel"),
        ),
    )(x_p, weight_p, bias_p)

    return out[:m, :num_classes]


if __name__ == "__main__":
    # Small shapes consistent with the module, chosen to exercise the padding
    # paths (batch not a multiple of 8, num_classes not a multiple of 128).
    batch = 6
    in_features = 256
    num_classes = 120

    key = jax.random.PRNGKey(0)
    kx, kw, kb = jax.random.split(key, 3)

    x = jax.random.normal(kx, (batch, in_features), dtype=jnp.float32)
    weight = jax.random.normal(kw, (num_classes, in_features), dtype=jnp.float32) * 0.02
    bias = jax.random.normal(kb, (num_classes,), dtype=jnp.float32) * 0.01

    # One-time parameter prep (padding; pass param_dtype=jnp.bfloat16 in
    # production to halve weight HBM traffic for this mem-bound fc layer).
    weight_p, bias_p = prepare_fc_params(weight, bias)

    out = resnet_classifier_forward(x, weight_p, bias_p, num_classes=num_classes)
    out = jax.block_until_ready(out)

    # Correctness check against the plain-JAX reference of nn.Linear.
    ref = x @ weight.T + bias
    assert out.shape == (batch, num_classes)
    assert jnp.allclose(out, ref, atol=1e-4, rtol=1e-4)

    print("KERNEL_OK")
</pallas_src>

<mosaic_0001>
module attributes {stable_mosaic.version = 11 : i64} {
  func.func @_fc_kernel(%arg0: i32, %arg1: i32, %arg2: memref<8x256xf32, #tpu.memory_space<vmem>>, %arg3: memref<128x256xf32, #tpu.memory_space<vmem>>, %arg4: memref<1x128xf32, #tpu.memory_space<vmem>>, %arg5: memref<8x128xf32, #tpu.memory_space<vmem>>) attributes {dimension_semantics = [#tpu.dimension_semantics<parallel>, #tpu.dimension_semantics<parallel>], iteration_bounds = array<i64: 1, 1>, scalar_prefetch = 0 : i64, scratch_operands = 0 : i64, tpu.core_type = #tpu.core_type<tc>, window_params = [{transform_indices = @transform_0, window_bounds = array<i64: 8, 256>}, {transform_indices = @transform_1, window_bounds = array<i64: 128, 256>}, {transform_indices = @transform_2, window_bounds = array<i64: 1, 128>}, {transform_indices = @transform_3, window_bounds = array<i64: 8, 128>}]} {
    %c0 = arith.constant 0 : index
    %c0_0 = arith.constant 0 : index
    %0 = vector.load %arg2[%c0, %c0_0] : memref<8x256xf32, #tpu.memory_space<vmem>>, vector<8x256xf32>
    %c0_1 = arith.constant 0 : index
    %c0_2 = arith.constant 0 : index
    %1 = vector.load %arg3[%c0_1, %c0_2] : memref<128x256xf32, #tpu.memory_space<vmem>>, vector<128x256xf32>
    %cst = arith.constant dense<0.000000e+00> : vector<8x128xf32>
    %2 = tpu.matmul %0, %1, %cst {dimension_numbers = #tpu.dot_dimension_numbers<[1], [1], [0], [0], [0, 0, 1, 0], [], []>} : vector<8x256xf32>, vector<128x256xf32>, vector<8x128xf32> -> vector<8x128xf32>
    %c0_3 = arith.constant 0 : index
    %c0_4 = arith.constant 0 : index
    %3 = vector.load %arg4[%c0_3, %c0_4] : memref<1x128xf32, #tpu.memory_space<vmem>>, vector<1x128xf32>
    %4 = vector.broadcast %3 : vector<1x128xf32> to vector<8x128xf32>
    %5 = arith.addf %2, %4 : vector<8x128xf32>
    %c0_5 = arith.constant 0 : index
    %c0_6 = arith.constant 0 : index
    %6 = vector.load %arg5[%c0_5, %c0_6] : memref<8x128xf32, #tpu.memory_space<vmem>>, vector<8x128xf32>
    tpu.vector_store %arg5[%c0_5, %c0_6], %5 {strides = array<i32>} : memref<8x128xf32, #tpu.memory_space<vmem>>, vector<8x128xf32>,
    return
  }
  func.func @transform_0(%arg0: i32, %arg1: i32) -> (i32, i32) {
    %c0_i32 = arith.constant 0 : i32
    %c0_i32_0 = arith.constant 0 : i32
    return %arg0, %c0_i32 : i32, i32
  }
  func.func @transform_1(%arg0: i32, %arg1: i32) -> (i32, i32) {
    %c0_i32 = arith.constant 0 : i32
    %c0_i32_0 = arith.constant 0 : i32
    return %arg1, %c0_i32 : i32, i32
  }
  func.func @transform_2(%arg0: i32, %arg1: i32) -> (i32, i32) {
    %c0_i32 = arith.constant 0 : i32
    %c0_i32_0 = arith.constant 0 : i32
    return %c0_i32, %arg1 : i32, i32
  }
  func.func @transform_3(%arg0: i32, %arg1: i32) -> (i32, i32) {
    %c0_i32 = arith.constant 0 : i32
    return %arg0, %arg1 : i32, i32
  }
}

</mosaic_0001>

<bundles_post_ra>
// kernel: resnet_classifier_forward.1
= control target key start
LH: loop header
LB: loop body
LE: loop exit
PB: predicated region body
PF: predicated region fallthrough
CT: control target
= control target key end

     0   :  { %8 = vsyncpa [#allocation3], 0  ;;  %s298_s0 = inlined_call_operand.vmem [shape: f32[8,256], index: 0, kind: input, shape index: {}]   ;;  %s299_s1 = inlined_call_operand.hbm [shape: f32[128,256], index: 1, kind: input, shape index: {}]   ;;  %s300_s2 = inlined_call_operand.vmem [shape: f32[1,128], index: 2, kind: input, shape index: {}]   ;;  %s301_s3 = inlined_call_operand.hbm [shape: f32[8,128], index: 3, kind: output, shape index: {}]  }
   0x1   :  { %9 = vsyncpa [#allocation4], 0  ;;  %s241_s12 = smov [#allocation2]   ;;  %s193_s16 = scalar_lea.hbm %s299_s1, 4096 }
   0x2   :  { %s17_s13 = sshll.u32 %s241_s12, 4  ;;  %p194_p0 = scmp.ne.s32.totalorder %s299_s1, %s193_s16  ;;  %s18_s13 = int_to_ptr.vmem [resolvable:$true] %s17_s13 }
   0x3   :  { %p197_p1 = scmp.lt.u32.totalorder %s193_s16, %s299_s1 }
   0x5   :  { %p199_p2 = pnand %p197_p1, %p194_p0 }
   0x7   :  { %202 = shalt.err (!%p199_p2)
}
   0x8   :  { %s203_s21 = scalar_lea.vmem %s18_s13, 4096  ;;  %p208_p4 = scmp.lt.s32.totalorder %s18_s13, %s18_s13 }
   0x9   :  { %p204_p3 = scmp.ne.s32.totalorder %s18_s13, %s203_s21  ;;  %p209_p5 = scmp.lt.s32.totalorder %s203_s21, %s203_s21 }
   0xb   :  { %p210_p6 = por %p209_p5, %p208_p4 }
   0xd   :  { %p211_p7 = pnand %p210_p6, %p204_p3 }
   0xf   :  { %214 = shalt.err (!%p211_p7)
}
  0x10   :  { %s242_s22 = smov 256   ;;  %s243_s23 = smov 16  }
  0x11   :  { %23 = dma.hbm_to_vmem [thread:$0]  %s299_s1, 4096, %s18_s13, [#allocation3], %s242_s22, %s242_s22, %s243_s23  }
  0x12   :  { %237 = dma.done.wait [#allocation3], 4096  }
  0x13   :  { %238 = vsyncadd [#allocation3], 4294963200  ;;  %v32_v0 = vld [vmem:[#allocation2 + $0x8] sm:$0xff]  ;;  %v34_v1 = vld [vmem:[#allocation2 + $0x18] sm:$0xff]  ;;  %s244_s4 = smov [#allocation5]  }
  0x14   :  { %v31_v2 = vld [vmem:[#allocation2] sm:$0xff]  ;;  %v157_v3 = vpack.c.bf16 %v34_v1, %v32_v0  ;;  %v33_v4 = vld [vmem:[#allocation2 + $0x10] sm:$0xff]  ;;  %v36_v5 = vld [vmem:[#allocation2 + $0x28] sm:$0xff]  ;;  %s147_s5 = sshll.u32 %s244_s4, 4  ;;  %s148_s5 = int_to_ptr.vmem [resolvable:$true] %s147_s5 }
  0x15   :  { %v38_v6 = vld [vmem:[#allocation2 + $0x38] sm:$0xff]  ;;  %v159_v7 = vpack.c.bf16 %v33_v4, %v31_v2  ;;  %v35_v9 = vld [vmem:[#allocation2 + $0x20] sm:$0xff]  ;;  %v37_v10 = vld [vmem:[#allocation2 + $0x30] sm:$0xff]  ;;  %s215_s6 = scalar_lea.vmem %s148_s5, 128  ;;  %p220_p9 = scmp.lt.s32.totalorder %s148_s5, %s148_s5 }
  0x16   :  { %v161_v8 = vpack.c.bf16 %v38_v6, %v36_v5  ;;  %158 = vmatprep.subr.bf16.mxu0 %v157_v3  ;;  %v40_v11 = vld [vmem:[#allocation2 + $0x48] sm:$0xff]  ;;  %v42_v12 = vld [vmem:[#allocation2 + $0x58] sm:$0xff]  ;;  %v163_v13 = vpack.c.bf16 %v37_v10, %v35_v9  ;;  %v39_v16 = vld [vmem:[#allocation2 + $0x40] sm:$0xff]  ;;  %p216_p8 = scmp.ne.s32.totalorder %s148_s5, %s215_s6  ;;  %p221_p10 = scmp.lt.s32.totalorder %s215_s6, %s215_s6 }
  0x17   :  { %160 = vmatpush1.bf16.xpose.msra.mxu0 %v159_v7  ;;  %v165_v14 = vpack.c.bf16 %v42_v12, %v40_v11  ;;  %v30_v15 = vld [vmem:[%s298_s0 + $0x8] sm:$0xff]  ;;  %v41_v17 = vld [vmem:[#allocation2 + $0x50] sm:$0xff]  ;;  %v44_v18 = vld [vmem:[#allocation2 + $0x68] sm:$0xff] }
  0x18   :  { %162 = vmatprep.subr.bf16.mxu0 %v161_v8  ;;  %134 = vmatprep.mubr.f32.mxu0 %v30_v15  ;;  %v46_v19 = vld [vmem:[#allocation2 + $0x78] sm:$0xff]  ;;  %v167_v20 = vpack.c.bf16 %v41_v17, %v39_v16  ;;  %v43_v22 = vld [vmem:[#allocation2 + $0x60] sm:$0xff]  ;;  %v45_v23 = vld [vmem:[#allocation2 + $0x70] sm:$0xff]  ;;  %p222_p11 = por %p221_p10, %p220_p9 }
  0x19   :  { %v169_v21 = vpack.c.bf16 %v46_v19, %v44_v18  ;;  %v48_v24 = vld [vmem:[#allocation2 + $0x88] sm:$0xff]  ;;  %v50_v25 = vld [vmem:[#allocation2 + $0x98] sm:$0xff]  ;;  %v171_v26 = vpack.c.bf16 %v45_v23, %v43_v22  ;;  %v47_v28 = vld [vmem:[#allocation2 + $0x80] sm:$0xff] }
  0x1a   :  { %v173_v27 = vpack.c.bf16 %v50_v25, %v48_v24  ;;  %v49_v29 = vld [vmem:[#allocation2 + $0x90] sm:$0xff]  ;;  %v52_v30 = vld [vmem:[#allocation2 + $0xa8] sm:$0xff]  ;;  %v54_v31 = vld [vmem:[#allocation2 + $0xb8] sm:$0xff]  ;;  %p223_p12 = pnand %p222_p11, %p216_p8 }
  0x1b   :  { %v175_v32 = vpack.c.bf16 %v49_v29, %v47_v28  ;;  %v177_v33 = vpack.c.bf16 %v54_v31, %v52_v30  ;;  %v51_v34 = vld [vmem:[#allocation2 + $0xa0] sm:$0xff]  ;;  %v53_v35 = vld [vmem:[#allocation2 + $0xb0] sm:$0xff]  ;;  %v56_v36 = vld [vmem:[#allocation2 + $0xc8] sm:$0xff] }
  0x1c   :  { %v58_v37 = vld [vmem:[#allocation2 + $0xd8] sm:$0xff]  ;;  %v179_v38 = vpack.c.bf16 %v53_v35, %v51_v34  ;;  %v55_v40 = vld [vmem:[#allocation2 + $0xc0] sm:$0xff]  ;;  %v57_v41 = vld [vmem:[#allocation2 + $0xd0] sm:$0xff] }
  0x1d   :  { %v181_v39 = vpack.c.bf16 %v58_v37, %v56_v36  ;;  %v60_v42 = vld [vmem:[#allocation2 + $0xe8] sm:$0xff]  ;;  %v62_v43 = vld [vmem:[#allocation2 + $0xf8] sm:$0xff]  ;;  %v183_v44 = vpack.c.bf16 %v57_v41, %v55_v40  ;;  %v59_v46 = vld [vmem:[#allocation2 + $0xe0] sm:$0xff] }
  0x1e   :  { %v185_v45 = vpack.c.bf16 %v62_v43, %v60_v42  ;;  %v61_v47 = vld [vmem:[#allocation2 + $0xf0] sm:$0xff] }
  0x1f   :  { %164 = vmatpush1.bf16.xpose.msra.mxu0 %v163_v13  ;;  %v187_v48 = vpack.c.bf16 %v61_v47, %v59_v46  ;;  %v29_v49 = vld [vmem:[%s298_s0] sm:$0xff] }
  0x20   :  { %166 = vmatprep.subr.bf16.mxu0 %v165_v14  ;;  %v156_v50 = vld [vmem:[%s300_s2] ss:$0 sm:$0xff] }
  0x27   :  { %168 = vmatpush1.bf16.xpose.msra.mxu0 %v167_v20 }
  0x28   :  { %170 = vmatprep.subr.bf16.mxu0 %v169_v21 }
  0x2f   :  { %172 = vmatpush1.bf16.xpose.msra.mxu0 %v171_v26 }
  0x30   :  { %174 = vmatprep.subr.bf16.mxu0 %v173_v27 }
  0x37   :  { %176 = vmatpush1.bf16.xpose.msra.mxu0 %v175_v32 }
  0x38   :  { %178 = vmatprep.subr.bf16.mxu0 %v177_v33 }
  0x3f   :  { %180 = vmatpush1.bf16.xpose.msra.mxu0 %v179_v38 }
  0x40   :  { %182 = vmatprep.subr.bf16.mxu0 %v181_v39 }
  0x47   :  { %184 = vmatpush1.bf16.xpose.msra.mxu0 %v183_v44 }
  0x48   :  { %186 = vmatprep.subr.bf16.mxu0 %v185_v45 }
  0x4f   :  { %188 = vmatpush1.bf16.xpose.msra.mxu0 %v187_v48 }
  0x56   :  { %135 = vmatmul.mubr.f32.vlgmr.msra.gmra.mrb[0].mxu0 %v29_v49 }
 0x129   :  { %v136_v51 = vpop.f32.mrb[0].mxu0 }
 0x12a   :  { %v137_v52 = vadd.f32 %v156_v50, %v136_v51  ;;  %v138_v53 = vpop.f32.mrb[1].mxu0 }
 0x12c   :  { %140 = vst [vmem:[#allocation5] sm:$0xff] %v137_v52 }
 0x12d   :  { %226 = shalt.err (!%p223_p12)
}
 0x12e   :  { %s227_s8 = scalar_lea.hbm %s301_s3, 128 }
 0x12f   :  { %p228_p13 = scmp.ne.s32.totalorder %s301_s3, %s227_s8  ;;  %p231_p0 = scmp.lt.u32.totalorder %s227_s8, %s301_s3 }
 0x131   :  { %p233_p1 = pnand %p231_p0, %p228_p13 }
 0x133   :  { %236 = shalt.err (!%p233_p1)
}
 0x134   :  { %150 = dma.vmem_to_hbm [thread:$0]  %s148_s5, 128, %s301_s3, [#allocation4]  }
 0x135   :  { %239 = dma.done.wait [#allocation4], 128  }
 0x136   :  { %240 = vsyncadd [#allocation4], 4294967168 }
 0x137   :  { %154 = vsyncpa [#allocation3], 1 }
 0x138   :  { %155 = vsyncpa [#allocation4], 1 }

</bundles_post_ra>
